<compile_context>
chip_gen: v7x
topology: tpu7x:2x2x1
jax: 0.10.0
libtpu: 0.0.40
codegen_flags: <defaults>
</compile_context>

<pallas_src>
import functools
import math

import jax
import jax.numpy as jnp
from jax.experimental import pallas as pl
from jax.experimental.pallas import tpu as pltpu

EPS = 1e-5  # PyTorch nn.LayerNorm default


def attention_kernel(
    vi_ref, vq_ref,
    wqk_ref, bqk_ref,
    wv_ref, bv_ref,
    gamma_ref, beta_ref,
    o_ref,
    *, compute_dtype,
):
    tb, S, E = vi_ref.shape
    scale = 1.0 / math.sqrt(E)
    cd = compute_dtype

    vq_in = vq_ref[...]                                       # input dtype (f32/bf16)
    vq = vq_in.astype(jnp.float32)                            # (tb, E) residual, f32
    vi = vi_ref[...].astype(jnp.float32)                      # (tb, S, E) f32 elementwise

    # ---- folded Q/K projection: qhat = (vq@Wq + bq) @ Wk^T — one MXU matmul ----
    qhat = jnp.dot(vq_in.astype(cd), wqk_ref[...],
                   preferred_element_type=jnp.float32) + bqk_ref[...]   # (tb, E) f32

    # ---- single-query attention (per-row KV => batched matvec; VPU + reduce) ----
    scores = jnp.sum(qhat[:, None, :] * vi, axis=-1) * scale  # (tb, S)
    m = jnp.max(scores, axis=-1, keepdims=True)
    p = jnp.exp(scores - m)                                   # EUP slot
    attn = p / jnp.sum(p, axis=-1, keepdims=True)             # (tb, S)
    # TODO(synk): if S grows while staying <128, lay scores out as (S, tile_b)
    # for lane-dense softmax; negligible at S=8.

    # ---- folded V projection: att = (attn-weighted vi) @ Wv + bv ----
    mix = jnp.sum(attn[:, :, None] * vi, axis=1)              # (tb, E) f32
    att = jnp.dot(mix.astype(cd), wv_ref[...],
                  preferred_element_type=jnp.float32) + bv_ref[...]     # (tb, E) f32

    # ---- residual + LayerNorm (biased variance, matches nn.LayerNorm) ----
    h = att + vq
    mu = jnp.mean(h, axis=-1, keepdims=True)
    var = jnp.mean((h - mu) * (h - mu), axis=-1, keepdims=True)
    u = (h - mu) * jax.lax.rsqrt(var + EPS) * gamma_ref[...] + beta_ref[...]

    o_ref[...] = u.astype(o_ref.dtype)


def attention_forward(vi, vq, params, *, tile_b=None, compute_dtype=jnp.float32):
    """vi: (B, S, E), vq: (B, E) (f32 or bf16) -> (B, E) in vq.dtype."""
    B, S, E = vi.shape
    assert vq.shape == (B, E)

    # ---- weight folding + one-time cast, outside the kernel (tiny XLA ops) ----
    wq = params["wq"].astype(jnp.float32)
    wk = params["wk"].astype(jnp.float32)
    bq = params["bq"].astype(jnp.float32)
    wqk = (wq @ wk.T).astype(compute_dtype)        # (E, E) — folded Q/K weight
    bqk = bq @ wk.T                                # (1, E) f32 (bias add stays f32)
    wv = params["wv"].astype(compute_dtype)        # (E, E)
    bv = params["bv"].astype(jnp.float32)
    gamma = params["gamma"].astype(jnp.float32)
    beta = params["beta"].astype(jnp.float32)

    # ---- tiling (sublane multiple depends on activation dtype) ----
    in_itemsize = jnp.dtype(vi.dtype).itemsize
    sublane = 8 if in_itemsize >= 4 else (16 if in_itemsize == 2 else 32)
    if tile_b is None:
        tile_b = B if B <= 256 else 256
    assert B % tile_b == 0, "pad the batch so tile_b divides B"
    assert tile_b == B or tile_b % sublane == 0
    # TODO(synk): masked last tile (pl.when / masked store) for ragged batches.
    grid = (B // tile_b,)
    steps = B // tile_b

    # ---- explicit VMEM budget (v7x: 64 MiB physical; v5e: 16 MiB scoped default) ----
    cd_bytes = jnp.dtype(compute_dtype).itemsize
    single_buffer_weights = E >= 512               # v7x: don't double-buffer big weights
    weight_bufs = 1 if single_buffer_weights else 2
    vi_blk = tile_b * S * E * in_itemsize
    vq_blk = tile_b * E * jnp.dtype(vq.dtype).itemsize
    out_blk = tile_b * E * jnp.dtype(vq.dtype).itemsize
    weight_bytes = 2 * E * E * cd_bytes + 5 * E * 4
    temps = 6 * tile_b * S * E * 4                 # in-kernel f32 vi copy + broadcasts
    step_bytes = 2 * (vi_blk + vq_blk + out_blk) + weight_bufs * weight_bytes + temps
    vmem_limit = int(min(max(2 * step_bytes, 32 * 1024 * 1024), 64 * 1024 * 1024))

    def const(shape):
        if single_buffer_weights:
            return pl.BlockSpec(shape, lambda i: (0,) * len(shape),
                                pipeline_mode=pl.Buffered(1))
        return pl.BlockSpec(shape, lambda i: (0,) * len(shape))

    cost = pl.CostEstimate(
        flops=int(4 * B * E * E + 4 * B * S * E + 14 * B * E),
        transcendentals=int(B * S + B),
        bytes_accessed=int(B * S * E * in_itemsize
                           + 2 * B * E * jnp.dtype(vq.dtype).itemsize
                           + steps * weight_bytes),
    )

    kernel = functools.partial(attention_kernel, compute_dtype=compute_dtype)

    return pl.pallas_call(
        kernel,
        out_shape=jax.ShapeDtypeStruct((B, E), vq.dtype),
        grid_spec=pltpu.PrefetchScalarGridSpec(
            num_scalar_prefetch=0,
            grid=grid,
            in_specs=[
                pl.BlockSpec((tile_b, S, E), lambda i: (i, 0, 0)),   # vi tile
                pl.BlockSpec((tile_b, E), lambda i: (i, 0)),         # vq tile
                const((E, E)), const((1, E)),                        # wqk, bqk
                const((E, E)), const((1, E)),                        # wv, bv
                const((1, E)), const((1, E)),                        # gamma, beta
            ],
            out_specs=pl.BlockSpec((tile_b, E), lambda i: (i, 0)),
        ),
        compiler_params=pltpu.CompilerParams(
            dimension_semantics=("parallel",),
            vmem_limit_bytes=vmem_limit,
        ),
        cost_estimate=cost,
    )(vi, vq, wqk, bqk, wv, bv, gamma, beta)


def init_params(key, embed_size):
    """PyTorch-like uniform init for the linears, ones/zeros for LayerNorm."""
    ks = jax.random.split(key, 6)
    bound = 1.0 / math.sqrt(embed_size)

    def lin(kw, kb):
        w = jax.random.uniform(kw, (embed_size, embed_size), jnp.float32, -bound, bound)
        b = jax.random.uniform(kb, (1, embed_size), jnp.float32, -bound, bound)
        return w, b

    wq, bq = lin(ks[0], ks[1])
    wk, bk = lin(ks[2], ks[3])
    wv, bv = lin(ks[4], ks[5])
    return dict(
        wq=wq, bq=bq, wk=wk, bk=bk, wv=wv, bv=bv,
        gamma=jnp.ones((1, embed_size), jnp.float32),
        beta=jnp.zeros((1, embed_size), jnp.float32),
    )


def attention_ref(vi, vq, p):
    """Pure-JAX reference of the PyTorch forward (unfolded)."""
    B, S, E = vi.shape
    q = vq @ p["wq"] + p["bq"]                                # (B, E)
    k = vi @ p["wk"] + p["bk"]                                # (B, S, E)
    v = vi @ p["wv"] + p["bv"]                                # (B, S, E)
    scores = jnp.einsum("be,bse->bs", q, k) / math.sqrt(E)
    w = jax.nn.softmax(scores, axis=-1)
    att = jnp.einsum("bs,bse->be", w, v)
    h = att + vq
    mu = jnp.mean(h, axis=-1, keepdims=True)
    var = jnp.mean((h - mu) ** 2, axis=-1, keepdims=True)
    return (h - mu) / jnp.sqrt(var + EPS) * p["gamma"] + p["beta"]


if __name__ == "__main__":
    embed_size = 128   # multiple of 128 -> lane-dense loads/stores
    seq_len = 8
    batch = 64         # grid=(8,) with tile_b=8 -> >=4 steps per v7x TensorCore

    key = jax.random.PRNGKey(0)
    kvi, kvq, kp = jax.random.split(key, 3)
    vi = jax.random.normal(kvi, (batch, seq_len, embed_size), jnp.float32)
    vq = jax.random.normal(kvq, (batch, embed_size), jnp.float32)
    params = init_params(kp, embed_size)

    ref = attention_ref(vi, vq, params)

    # fp32 path (accuracy check vs reference; fold is exact up to reassociation)
    out = attention_forward(vi, vq, params, tile_b=8)
    out = jax.block_until_ready(out)
    assert out.shape == (batch, embed_size)
    assert jnp.allclose(out, ref, atol=1e-3, rtol=1e-3), "fp32 mismatch vs JAX reference"

    # bf16 fast path: bf16 activations at the boundary (half the vi DMA bytes),
    # bf16 MXU operands with f32 accumulation, f32 elementwise math in-kernel.
    out_bf16 = attention_forward(
        vi.astype(jnp.bfloat16), vq.astype(jnp.bfloat16), params,
        tile_b=16, compute_dtype=jnp.bfloat16)
    out_bf16 = jax.block_until_ready(out_bf16)
    assert jnp.allclose(out_bf16.astype(jnp.float32), ref,
                        atol=1e-1, rtol=1e-1), "bf16 path diverged"

    print("KERNEL_OK")
</pallas_src>

<mosaic_0001>
module attributes {stable_mosaic.version = 11 : i64} {
  func.func @attention_kernel(%arg0: i32, %arg1: memref<8x8x128xf32, #tpu.memory_space<vmem>>, %arg2: memref<8x128xf32, #tpu.memory_space<vmem>>, %arg3: memref<128x128xf32, #tpu.memory_space<vmem>>, %arg4: memref<1x128xf32, #tpu.memory_space<vmem>>, %arg5: memref<128x128xf32, #tpu.memory_space<vmem>>, %arg6: memref<1x128xf32, #tpu.memory_space<vmem>>, %arg7: memref<1x128xf32, #tpu.memory_space<vmem>>, %arg8: memref<1x128xf32, #tpu.memory_space<vmem>>, %arg9: memref<8x128xf32, #tpu.memory_space<vmem>>) attributes {dimension_semantics = [#tpu.dimension_semantics<parallel>], iteration_bounds = array<i64: 8>, scalar_prefetch = 0 : i64, scratch_operands = 0 : i64, tpu.core_type = #tpu.core_type<tc>, window_params = [{transform_indices = @transform_0, window_bounds = array<i64: 8, 8, 128>}, {transform_indices = @transform_1, window_bounds = array<i64: 8, 128>}, {pipeline_mode = #tpu.pipeline_mode<synchronous>, transform_indices = @transform_2, window_bounds = array<i64: 128, 128>}, {pipeline_mode = #tpu.pipeline_mode<synchronous>, transform_indices = @transform_3, window_bounds = array<i64: 1, 128>}, {pipeline_mode = #tpu.pipeline_mode<synchronous>, transform_indices = @transform_4, window_bounds = array<i64: 128, 128>}, {pipeline_mode = #tpu.pipeline_mode<synchronous>, transform_indices = @transform_5, window_bounds = array<i64: 1, 128>}, {pipeline_mode = #tpu.pipeline_mode<synchronous>, transform_indices = @transform_6, window_bounds = array<i64: 1, 128>}, {pipeline_mode = #tpu.pipeline_mode<synchronous>, transform_indices = @transform_7, window_bounds = array<i64: 1, 128>}, {transform_indices = @transform_8, window_bounds = array<i64: 8, 128>}]} {
    %c0 = arith.constant 0 : index
    %c0_0 = arith.constant 0 : index
    %0 = vector.load %arg2[%c0, %c0_0] : memref<8x128xf32, #tpu.memory_space<vmem>>, vector<8x128xf32>
    %c0_1 = arith.constant 0 : index
    %c0_2 = arith.constant 0 : index
    %c0_3 = arith.constant 0 : index
    %1 = vector.load %arg1[%c0_1, %c0_2, %c0_3] : memref<8x8x128xf32, #tpu.memory_space<vmem>>, vector<8x8x128xf32>
    %c0_4 = arith.constant 0 : index
    %c0_5 = arith.constant 0 : index
    %2 = vector.load %arg3[%c0_4, %c0_5] : memref<128x128xf32, #tpu.memory_space<vmem>>, vector<128x128xf32>
    %cst = arith.constant dense<0.000000e+00> : vector<8x128xf32>
    %3 = tpu.matmul %0, %2, %cst {dimension_numbers = #tpu.dot_dimension_numbers<[1], [0], [0], [1], [0, 0, 1, 1], [], []>} : vector<8x128xf32>, vector<128x128xf32>, vector<8x128xf32> -> vector<8x128xf32>
    %c0_6 = arith.constant 0 : index
    %c0_7 = arith.constant 0 : index
    %4 = vector.load %arg4[%c0_6, %c0_7] : memref<1x128xf32, #tpu.memory_space<vmem>>, vector<1x128xf32>
    %5 = vector.broadcast %4 : vector<1x128xf32> to vector<8x128xf32>
    %6 = arith.addf %3, %5 : vector<8x128xf32>
    %7 = vector.shape_cast %6 : vector<8x128xf32> to vector<8x1x128xf32>
    %8 = vector.broadcast %7 : vector<8x1x128xf32> to vector<8x8x128xf32>
    %9 = arith.mulf %8, %1 : vector<8x8x128xf32>
    %cst_8 = arith.constant dense<0.000000e+00> : vector<8x8xf32>
    %10 = vector.multi_reduction <add>, %9, %cst_8 [2] : vector<8x8x128xf32> to vector<8x8xf32>
    %cst_9 = arith.constant 0.0883883461 : f32
    %11 = vector.broadcast %cst_9 : f32 to vector<8x8xf32>
    %12 = arith.mulf %10, %11 : vector<8x8xf32>
    %cst_10 = arith.constant dense<0xFF800000> : vector<8xf32>
    %13 = vector.multi_reduction <maximumf>, %12, %cst_10 [1] : vector<8x8xf32> to vector<8xf32>
    %14 = vector.shape_cast %13 : vector<8xf32> to vector<8x1xf32>
    %15 = vector.broadcast %14 : vector<8x1xf32> to vector<8x8xf32>
    %16 = arith.subf %12, %15 : vector<8x8xf32>
    %17 = math.exp %16 : vector<8x8xf32>
    %cst_11 = arith.constant dense<0.000000e+00> : vector<8xf32>
    %18 = vector.multi_reduction <add>, %17, %cst_11 [1] : vector<8x8xf32> to vector<8xf32>
    %19 = vector.shape_cast %18 : vector<8xf32> to vector<8x1xf32>
    %20 = vector.broadcast %19 : vector<8x1xf32> to vector<8x8xf32>
    %21 = arith.divf %17, %20 : vector<8x8xf32>
    %22 = vector.shape_cast %21 : vector<8x8xf32> to vector<8x8x1xf32>
    %23 = vector.broadcast %22 : vector<8x8x1xf32> to vector<8x8x128xf32>
    %24 = arith.mulf %23, %1 : vector<8x8x128xf32>
    %cst_12 = arith.constant dense<0.000000e+00> : vector<8x128xf32>
    %25 = vector.multi_reduction <add>, %24, %cst_12 [1] : vector<8x8x128xf32> to vector<8x128xf32>
    %c0_13 = arith.constant 0 : index
    %c0_14 = arith.constant 0 : index
    %26 = vector.load %arg5[%c0_13, %c0_14] : memref<128x128xf32, #tpu.memory_space<vmem>>, vector<128x128xf32>
    %cst_15 = arith.constant dense<0.000000e+00> : vector<8x128xf32>
    %27 = tpu.matmul %25, %26, %cst_15 {dimension_numbers = #tpu.dot_dimension_numbers<[1], [0], [0], [1], [0, 0, 1, 1], [], []>} : vector<8x128xf32>, vector<128x128xf32>, vector<8x128xf32> -> vector<8x128xf32>
    %c0_16 = arith.constant 0 : index
    %c0_17 = arith.constant 0 : index
    %28 = vector.load %arg6[%c0_16, %c0_17] : memref<1x128xf32, #tpu.memory_space<vmem>>, vector<1x128xf32>
    %29 = vector.broadcast %28 : vector<1x128xf32> to vector<8x128xf32>
    %30 = arith.addf %27, %29 : vector<8x128xf32>
    %31 = arith.addf %30, %0 : vector<8x128xf32>
    %cst_18 = arith.constant dense<0.000000e+00> : vector<8xf32>
    %32 = vector.multi_reduction <add>, %31, %cst_18 [1] : vector<8x128xf32> to vector<8xf32>
    %33 = vector.shape_cast %32 : vector<8xf32> to vector<8x1xf32>
    %cst_19 = arith.constant 1.280000e+02 : f32
    %34 = vector.broadcast %cst_19 : f32 to vector<8x1xf32>
    %35 = arith.divf %33, %34 : vector<8x1xf32>
    %36 = vector.broadcast %35 : vector<8x1xf32> to vector<8x128xf32>
    %37 = arith.subf %31, %36 : vector<8x128xf32>
    %38 = vector.broadcast %35 : vector<8x1xf32> to vector<8x128xf32>
    %39 = arith.subf %31, %38 : vector<8x128xf32>
    %40 = arith.mulf %37, %39 : vector<8x128xf32>
    %cst_20 = arith.constant dense<0.000000e+00> : vector<8xf32>
    %41 = vector.multi_reduction <add>, %40, %cst_20 [1] : vector<8x128xf32> to vector<8xf32>
    %42 = vector.shape_cast %41 : vector<8xf32> to vector<8x1xf32>
    %cst_21 = arith.constant 1.280000e+02 : f32
    %43 = vector.broadcast %cst_21 : f32 to vector<8x1xf32>
    %44 = arith.divf %42, %43 : vector<8x1xf32>
    %45 = vector.broadcast %35 : vector<8x1xf32> to vector<8x128xf32>
    %46 = arith.subf %31, %45 : vector<8x128xf32>
    %cst_22 = arith.constant 9.99999974E-6 : f32
    %47 = vector.broadcast %cst_22 : f32 to vector<8x1xf32>
    %48 = arith.addf %44, %47 : vector<8x1xf32>
    %49 = math.rsqrt %48 : vector<8x1xf32>
    %50 = vector.broadcast %49 : vector<8x1xf32> to vector<8x128xf32>
    %51 = arith.mulf %46, %50 : vector<8x128xf32>
    %c0_23 = arith.constant 0 : index
    %c0_24 = arith.constant 0 : index
    %52 = vector.load %arg7[%c0_23, %c0_24] : memref<1x128xf32, #tpu.memory_space<vmem>>, vector<1x128xf32>
    %53 = vector.broadcast %52 : vector<1x128xf32> to vector<8x128xf32>
    %54 = arith.mulf %51, %53 : vector<8x128xf32>
    %c0_25 = arith.constant 0 : index
    %c0_26 = arith.constant 0 : index
    %55 = vector.load %arg8[%c0_25, %c0_26] : memref<1x128xf32, #tpu.memory_space<vmem>>, vector<1x128xf32>
    %56 = vector.broadcast %55 : vector<1x128xf32> to vector<8x128xf32>
    %57 = arith.addf %54, %56 : vector<8x128xf32>
    %c0_27 = arith.constant 0 : index
    %c0_28 = arith.constant 0 : index
    %58 = vector.load %arg9[%c0_27, %c0_28] : memref<8x128xf32, #tpu.memory_space<vmem>>, vector<8x128xf32>
    tpu.vector_store %arg9[%c0_27, %c0_28], %57 {strides = array<i32>} : memref<8x128xf32, #tpu.memory_space<vmem>>, vector<8x128xf32>,
    return
  }
  func.func @transform_0(%arg0: i32) -> (i32, i32, i32) {
    %c0_i32 = arith.constant 0 : i32
    %c0_i32_0 = arith.constant 0 : i32
    %c0_i32_1 = arith.constant 0 : i32
    return %arg0, %c0_i32, %c0_i32_0 : i32, i32, i32
  }
  func.func @transform_1(%arg0: i32) -> (i32, i32) {
    %c0_i32 = arith.constant 0 : i32
    %c0_i32_0 = arith.constant 0 : i32
    return %arg0, %c0_i32 : i32, i32
  }
  func.func @transform_2(%arg0: i32) -> (i32, i32) {
    %c0_i32 = arith.constant 0 : i32
    %c0_i32_0 = arith.constant 0 : i32
    %c0_i32_1 = arith.constant 0 : i32
    return %c0_i32, %c0_i32_0 : i32, i32
  }
  func.func @transform_3(%arg0: i32) -> (i32, i32) {
    %c0_i32 = arith.constant 0 : i32
    %c0_i32_0 = arith.constant 0 : i32
    %c0_i32_1 = arith.constant 0 : i32
    return %c0_i32, %c0_i32_0 : i32, i32
  }
  func.func @transform_4(%arg0: i32) -> (i32, i32) {
    %c0_i32 = arith.constant 0 : i32
    %c0_i32_0 = arith.constant 0 : i32
    %c0_i32_1 = arith.constant 0 : i32
    return %c0_i32, %c0_i32_0 : i32, i32
  }
  func.func @transform_5(%arg0: i32) -> (i32, i32) {
    %c0_i32 = arith.constant 0 : i32
    %c0_i32_0 = arith.constant 0 : i32
    %c0_i32_1 = arith.constant 0 : i32
    return %c0_i32, %c0_i32_0 : i32, i32
  }
  func.func @transform_6(%arg0: i32) -> (i32, i32) {
    %c0_i32 = arith.constant 0 : i32
    %c0_i32_0 = arith.constant 0 : i32
    %c0_i32_1 = arith.constant 0 : i32
    return %c0_i32, %c0_i32_0 : i32, i32
  }
  func.func @transform_7(%arg0: i32) -> (i32, i32) {
    %c0_i32 = arith.constant 0 : i32
    %c0_i32_0 = arith.constant 0 : i32
    %c0_i32_1 = arith.constant 0 : i32
    return %c0_i32, %c0_i32_0 : i32, i32
  }
  func.func @transform_8(%arg0: i32) -> (i32, i32) {
    %c0_i32 = arith.constant 0 : i32
    %c0_i32_0 = arith.constant 0 : i32
    return %arg0, %c0_i32 : i32, i32
  }
}

</mosaic_0001>

<bundles_post_ra>
// kernel: tpu_custom_call.1
= control target key start
LH: loop header
LB: loop body
LE: loop exit
PB: predicated region body
PF: predicated region fallthrough
CT: control target
= control target key end

     0   :  { %s2257_s0 = inlined_call_operand.hbm [shape: f32[64,8,128], index: 0, kind: input, shape index: {}]   ;;  %s2258_s1 = inlined_call_operand.hbm [shape: f32[64,128], index: 1, kind: input, shape index: {}]   ;;  %s2259_s2 = inlined_call_operand.hbm [shape: f32[128,128], index: 2, kind: input, shape index: {}]   ;;  %s2260_s3 = inlined_call_operand.vmem [shape: f32[1,128], index: 3, kind: input, shape index: {}]   ;;  %s2261_s4 = inlined_call_operand.hbm [shape: f32[128,128], index: 4, kind: input, shape index: {}]   ;;  %s2262_s5 = inlined_call_operand.vmem [shape: f32[1,128], index: 5, kind: input, shape index: {}]   ;;  %s2263_s6 = inlined_call_operand.vmem [shape: f32[1,128], index: 6, kind: input, shape index: {}]   ;;  %s2264_s7 = inlined_call_operand.vmem [shape: f32[1,128], index: 7, kind: input, shape index: {}]   ;;  %s2265_s8 = inlined_call_operand.hbm [shape: f32[64,128], index: 8, kind: output, shape index: {}]  }
   0x1   :  { %2275 = sst [smem:[#allocation19_spill]] %s2257_s0 }
   0x2   :  { %2276 = sst [smem:[#allocation20_spill]] %s2259_s2 }
   0x3   :  { %2277 = sst [smem:[#allocation21_spill]] %s2261_s4 }
   0x4   :  { %13 = vsyncpa [#allocation3], 0 }
   0x5   :  { %15 = vsyncpa [#allocation3 + $0x1], 0 }
   0x6   :  { %16 = vsyncpa [#allocation6], 0 }
   0x7   :  { %18 = vsyncpa [#allocation6 + $0x1], 0 }
   0x8   :  { %19 = vsyncpa [#allocation9], 0 }
   0x9   :  { %20 = vsyncpa [#allocation4], 0 }
   0xa   :  { %22 = vsyncpa [#allocation4 + $0x1], 0  ;;  %s1779_s27 = smov 0   ;;  %s1781_s28 = smov 0  }
   0xb   :  { %s1783_s29 = smov 0   ;;  %s1785_s30 = smov 0  }
   0xc LB: > { %2278 = sst [smem:[#allocation16_spill]] %s1716_s29  ;;  %s1800_s9 = sadd.s32 4294967295, %s1720_s30   ;;  %s1720_s30 = sphi %s1785_s30, %s2302_s30   ;;  %s1716_s29 = sphi %s1783_s29, %s2304_s29   ;;  %s1712_s28 = sphi %s1781_s28, %s2306_s28   ;;  %s1708_s27 = sphi %s1779_s27, %s2305_s27  }
   0xd   : > { %s1234_s10 = sadd.s32 4294967294, %s1720_s30   ;;  %p48_p0 = scmp.ne.s32.totalorder %s1712_s28, %s1708_s27 }
   0xe   : > { %p2266_p1 = scmp.eq.s32.totalorder %s1800_s9, 0  ;;  %p230_p3 = scmp.eq.s32.totalorder %s1234_s10, 7 }
   0xf   : > { %p1235_p5 = scmp.ge.s32.totalorder %s1720_s30, 1  ;;  %p237_p7 = scmp.lt.s32.totalorder %s1720_s30, 9 }
  0x10   : > { %p1809_p4 = por %p2266_p1, %p48_p0  ;;  %p1814_p6 = por %p230_p3, %p48_p0 }
  0x11   : > { %p1819_p8 = pnand %p1235_p5, %p237_p7  ;;  %s1722_s14 = smov [#allocation7]  }
  0x12   : > { %s2279_s11 = scalar_select %p1809_p4, 1, 0 }
  0x13   : > { %s2280_s12 = scalar_select %p1814_p6, 1, 0 }
  0x14   : > { %s2281_s13 = scalar_select %p1819_p8, 1, 0 }
  0x15   : > { %s249_s15 = sshll.u32 %s1722_s14, 4  ;;  %p1425_p9 = pneg %p1819_p8  ;;  %s250_s15 = int_to_ptr.vmem [resolvable:$true] %s249_s15 }
  0x16   : > { %s1723_s17 = smov [#allocation8]   ;;  %s2283_s2 = sld [smem:[#allocation20_spill]] }
  0x17   : > { %p1827_p10 = pnand %p1425_p9, %p2266_p1  ;;  %s265_s18 = sshll.u32 %s1723_s17, 4  ;;  %s1831_s18 = int_to_ptr.vmem [resolvable:$true] %s265_s18 }
  0x19   : > { %p1528_p12 = pneg %p1827_p10 }
  0x1c   : > { %s1526_s21 = scalar_lea.hbm %s2283_s2, 2048 }
  0x1d   : > { %p1527_p11 = scmp.ne.s32.totalorder %s2283_s2, %s1526_s21  ;;  %p1533_p3 = scmp.lt.u32.totalorder %s1526_s21, %s2283_s2 }
  0x1f   : > { %p1529_p13 = pnand %p1528_p12, %p1527_p11 }
  0x21   : > { %p1530_p0 = pneg %p1529_p13 }
  0x23   : > { %p1535_p5 = pnand %p1533_p3, %p1530_p0 }
  0x25   : > { %1538 = shalt.err (!%p1535_p5)
}
  0x26   : > { %s1539_s26 = scalar_lea.vmem %s250_s15, 2048  ;;  %p1547_p2 = scmp.lt.s32.totalorder %s250_s15, %s250_s15 }
  0x27   : > { %p1540_p7 = scmp.ne.s32.totalorder %s250_s15, %s1539_s26  ;;  %p1548_p6 = scmp.lt.s32.totalorder %s1539_s26, %s1539_s26 }
  0x29   : > { %p1542_p9 = pnand %p1540_p7, %p1528_p12  ;;  %p1549_p4 = por %p1548_p6, %p1547_p2 }
  0x2b   : > { %p1543_p1 = pneg %p1542_p9 }
  0x2d   : > { %p1550_p8 = pnand %p1549_p4, %p1543_p1 }
  0x2f   : > { %1553 = shalt.err (!%p1550_p8)
}
  0x30   : > { %s2269_s10 = smov 128   ;;  %s2270_s14 = smov 8  }
  0x31   : > { %1428 = dma.hbm_to_vmem [thread:$0]  (!%p1827_p10), %s2283_s2, 2048, %s250_s15, [#allocation6], %s2269_s10, %s2269_s10, %s2270_s14  }
  0x32   : > { %s2284_s4 = sld [smem:[#allocation21_spill]] }
  0x38   : > { %s1554_s22 = scalar_lea.hbm %s2284_s4, 2048 }
  0x39   : > { %p1555_p1 = scmp.ne.s32.totalorder %s2284_s4, %s1554_s22  ;;  %p1561_p6 = scmp.lt.u32.totalorder %s1554_s22, %s2284_s4 }
  0x3b   : > { %p1557_p2 = pnand %p1555_p1, %p1528_p12 }
  0x3d   : > { %p1558_p4 = pneg %p1557_p2 }
  0x3f   : > { %p1563_p8 = pnand %p1561_p6, %p1558_p4 }
  0x41   : > { %1566 = shalt.err (!%p1563_p8)
}
  0x42   : > { %s1567_s15 = scalar_lea.vmem %s1831_s18, 2048  ;;  %p1575_p3 = scmp.lt.s32.totalorder %s1831_s18, %s1831_s18 }
  0x43   : > { %p1568_p11 = scmp.ne.s32.totalorder %s1831_s18, %s1567_s15  ;;  %p1576_p5 = scmp.lt.s32.totalorder %s1567_s15, %s1567_s15 }
  0x45   : > { %p1570_p13 = pnand %p1568_p11, %p1528_p12  ;;  %p1577_p7 = por %p1576_p5, %p1575_p3 }
  0x47   : > { %p1571_p0 = pneg %p1570_p13 }
  0x49   : > { %p1578_p9 = pnand %p1577_p7, %p1571_p0 }
  0x4b   : > { %1581 = shalt.err (!%p1578_p9)
}
  0x4c   : > { %1431 = dma.hbm_to_vmem [thread:$0]  (!%p1827_p10), %s2284_s4, 2048, %s1831_s18, [#allocation9], %s2269_s10, %s2269_s10, %s2270_s14  }
  0x4d   : > { %s1887_s16 = sadd.s32 1, %s1720_s30   ;;  %s35_s20 = sadd.s32 1, %s1716_s29 }
  0x4e   : > { %2285 = sst [smem:[#allocation17_spill]] %s1887_s16  ;;  %s32_s21 = ssub.s32 %s1720_s30, %s1887_s16 }
  0x4f   : > { %p42_p12 = scmp.ne.s32.totalorder %s1716_s29, %s1712_s28  ;;  %p33_p1 = scmp.eq.s32.totalorder %s32_s21, 0 }
  0x50   : > { %p43_p2 = scmp.eq.s32.totalorder %s1720_s30, 0  ;;  %p2286_p4 = scmp.eq.s32.totalorder %s1800_s9, 7 }
  0x51   : > { %p1445_p8 = scmp.lt.s32.totalorder %s1720_s30, 8  ;;  %s1906_s24 = sand.u32 1, %s1716_s29  }
  0x52   : > { %p1897_p6 = por %p2286_p4, %p42_p12  ;;  %p44_p11 = por %p43_p2, %p42_p12 }
  0x53   : > { %s1903_s23 = scalar_select %p33_p1, %s1716_s29, %s35_s20  }
  0x54   : > { %s2287_s22 = scalar_select %p1897_p6, 1, 0 }
  0x55   : > { %2288 = sst [smem:[#allocation18_spill]] %s1903_s23  ;;  %s1239_s18 = sshll.u32 %s1906_s24, 6 }
  0x56   : > { %s1258_s25 = sshll.u32 %s1720_s30, 10  ;;  %s2289_s0 = sld [smem:[#allocation19_spill]] }
  0x57   : > { %s292_s19 = scalar_lea.vmem [#allocation2], %s1239_s18  ;;  %p1917_p10 = pnand %p1445_p8, %p44_p11 }
  0x58   : > { %s299_s20 = sshll.u32 %s292_s19, 4  ;;  %s1242_s14 = sshll.u32 %s1906_s24, 3  ;;  %s1915_s20 = int_to_ptr.vmem [resolvable:$true] %s299_s20 }
  0x59   : > { %s289_s2 = scalar_lea.sflag [#allocation3], %s1906_s24  ;;  %p1584_p0 = pneg %p1917_p10 }
  0x5c   : > { %s1913_s17 = scalar_lea.hbm %s2289_s0, %s1258_s25  ;;  %s1587_s15 = scalar_lea.hbm %s2289_s0, 8192 }
  0x5d   : > { %s1582_s26 = scalar_lea.hbm %s1913_s17, 1024  ;;  %p1588_p7 = scmp.lt.u32.totalorder %s1913_s17, %s2289_s0 }
  0x5e   : > { %p1583_p13 = scmp.ne.s32.totalorder %s1913_s17, %s1582_s26  ;;  %p1589_p9 = scmp.lt.u32.totalorder %s1587_s15, %s1582_s26 }
  0x5f   : > { %p1591_p1 = scmp.lt.u32.totalorder %s1582_s26, %s1913_s17 }
  0x60   : > { %p1585_p3 = pnand %p1584_p0, %p1583_p13  ;;  %p1590_p12 = por %p1589_p9, %p1588_p7 }
  0x62   : > { %p1586_p5 = pneg %p1585_p3  ;;  %p1592_p2 = por %p1591_p1, %p1590_p12 }
  0x64   : > { %p1593_p4 = pnand %p1592_p2, %p1586_p5 }
  0x66   : > { %1596 = shalt.err (!%p1593_p4)
}
  0x67   : > { %s1597_s10 = scalar_lea.vmem %s1915_s20, 1024  ;;  %s1726_s18 = smov [#allocation2]  }
  0x68   : > { %p1598_p8 = scmp.ne.s32.totalorder %s1915_s20, %s1597_s10  ;;  %s1602_s25 = sshll.u32 %s1726_s18, 4  ;;  %s1603_s25 = int_to_ptr.vmem [resolvable:$false] %s1602_s25 }
  0x69   : > { %s1604_s4 = scalar_lea.vmem %s1603_s25, 2048  ;;  %p1605_p3 = scmp.lt.s32.totalorder %s1915_s20, %s1603_s25 }
  0x6a   : > { %p1600_p11 = pnand %p1598_p8, %p1584_p0  ;;  %p1606_p7 = scmp.lt.s32.totalorder %s1604_s4, %s1597_s10 }
  0x6c   : > { %p1601_p13 = pneg %p1600_p11  ;;  %p1607_p9 = por %p1606_p7, %p1605_p3 }
  0x6e   : > { %p1608_p12 = pnand %p1607_p9, %p1601_p13 }
  0x70   : > { %1611 = shalt.err (!%p1608_p12)
}
  0x71   : > { %s2291_s26 = smov 8   ;;  %s2292_s15 = smov 128  }
  0x72   : > { %1435 = dma.hbm_to_vmem [thread:$0]  (!%p1917_p10), %s1913_s17, 1024, %s1915_s20, %s289_s2, %s2292_s15, %s2292_s15, %s2291_s26  }
  0x73   : > { %s1243_s19 = sshll.u32 %s1720_s30, 7  ;;  %s313_s4 = scalar_lea.vmem [#allocation5], %s1242_s14 }
  0x74   : > { %s1958_s25 = scalar_lea.hbm %s2258_s1, %s1243_s19  ;;  %s320_s0 = sshll.u32 %s313_s4, 4  ;;  %s321_s0 = int_to_ptr.vmem [resolvable:$true] %s320_s0 }
  0x75   : > { %s2293_s23 = sand.u32 1, %s1720_s30   ;;  %s1612_s16 = scalar_lea.hbm %s1958_s25, 128 }
  0x76   : > { %s310_s29 = scalar_lea.sflag [#allocation6], %s2293_s23  ;;  %p1613_p5 = scmp.ne.s32.totalorder %s1958_s25, %s1612_s16 }
  0x77   : > { %s1617_s20 = scalar_lea.hbm %s2258_s1, 1024  ;;  %p1618_p4 = scmp.lt.u32.totalorder %s1958_s25, %s2258_s1 }
  0x78   : > { %p1615_p1 = pnand %p1613_p5, %p1584_p0  ;;  %p1619_p8 = scmp.lt.u32.totalorder %s1617_s20, %s1612_s16 }
  0x79   : > { %p1621_p13 = scmp.lt.u32.totalorder %s1612_s16, %s1958_s25 }
  0x7a   : > { %p1616_p2 = pneg %p1615_p1  ;;  %p1620_p11 = por %p1619_p8, %p1618_p4 }
  0x7c   : > { %p1622_p3 = por %p1621_p13, %p1620_p11 }
  0x7e   : > { %p1623_p7 = pnand %p1622_p3, %p1616_p2 }
  0x80   : > { %1626 = shalt.err (!%p1623_p7)
}
  0x81   : > { %s1627_s14 = scalar_lea.vmem %s321_s0, 128  ;;  %s1727_s23 = smov [#allocation5]  }
  0x82   : > { %p1628_p9 = scmp.ne.s32.totalorder %s321_s0, %s1627_s14  ;;  %s1632_s15 = sshll.u32 %s1727_s23, 4  ;;  %s1633_s15 = int_to_ptr.vmem [resolvable:$false] %s1632_s15 }
  0x83   : > { %s1634_s19 = scalar_lea.vmem %s1633_s15, 256  ;;  %p1635_p1 = scmp.lt.s32.totalorder %s321_s0, %s1633_s15 }
  0x84   : > { %p1630_p12 = pnand %p1628_p9, %p1584_p0  ;;  %p1636_p6 = scmp.lt.s32.totalorder %s1634_s19, %s1627_s14 }
  0x86   : > { %p1631_p5 = pneg %p1630_p12  ;;  %p1637_p4 = por %p1636_p6, %p1635_p1 }
  0x88   : > { %p1638_p8 = pnand %p1637_p4, %p1631_p5 }
  0x8a   : > { %1641 = shalt.err (!%p1638_p8)
}
  0x8b   : > { %1438 = dma.hbm_to_vmem [thread:$0]  (!%p1917_p10), %s1958_s25, 128, %s321_s0, %s310_s29  }
  0x8c   : > { %p2294_p2 = scmp.ne.s32.totalorder %s2281_s13, 0 }
  0x8d   : > { %s1986_s16 = sand.u32 (!%p2294_p2), 1, %s1712_s28   ;;  %p2295_p6 = scmp.ne.s32.totalorder (!%p2294_p2), %s2279_s11, 0 }
  0x8e   : > { %329 = sbr.rel (%p2294_p2) target bundleno = 1763 (0x6e3), region = 52  ;;  %s1245_s18 = sshll.u32 (!%p2294_p2), %s1986_s16, 6 }
  0x8f   : > { %s332_s10 = scalar_lea.sflag (!%p2294_p2), [#allocation3], %s1986_s16  ;;  %s1990_s4 = scalar_lea.vmem (!%p2294_p2), [#allocation2], %s1245_s18 }
  0x95   : > { %1687 = dma.done.wait (%p2295_p6), %s332_s10, 1024  }
  0x96   : > { %1689 = vsyncadd (%p2295_p6), %s332_s10, 4294966272  ;;  %s340_s0 = sand.u32 1, %s1800_s9   ;;  %s1246_s29 = sshll.u32 %s1986_s16, 3 }
  0x97   : > { %s341_s13 = scalar_lea.sflag [#allocation6], %s340_s0  ;;  %s2000_s21 = scalar_lea.vmem [#allocation5], %s1246_s29 }
  0x98   : > { %1691 = dma.done.wait (%p2295_p6), %s341_s13, 128  }
  0x99   : > { %1693 = vsyncadd (%p2295_p6), %s341_s13, 4294967168  ;;  %p2296_p10 = scmp.eq.s32.totalorder %s1800_s9, 0 }
  0x9b   : > { %1695 = dma.done.wait (%p2296_p10), [#allocation6], 2048   ;;  %p2297_p0 = pmov %p2296_p10 }
  0x9d   : > { %1697 = vsyncadd (%p2297_p0), [#allocation6], 4294965248  ;;  %p2298_p11 = pmov %p2297_p0 }
  0x9e   : > { %p2299_p13 = pmov %p2297_p0 }
  0x9f   : > { %1699 = dma.done.wait (%p2298_p11), [#allocation9], 2048  }
  0xa0   : > { %1701 = vsyncadd (%p2299_p13), [#allocation9], 4294965248  ;;  %v1728_v0 = vmov 0.0|0.0   ;;  %vm1729_vm0 = vmmov 0   ;;  %v1730_v1 = vmov 0.0   ;;  %v400_v2 = vld [vmem:[#allocation7] sm:$0xff]  ;;  %v498_v29 = vlaneseq }
  0xa1   : > { %1363 = vmatprep.subr.bf16.mxu0 %v1728_v0  ;;  %1325 = vmatprep.mubr.msk.f32.mxu0 %vm1729_vm0, %v1730_v1  ;;  %v401_v3 = vld [vmem:[#allocation7 + $0x8] sm:$0xff]  ;;  %v402_v4 = vld [vmem:[#allocation7 + $0x10] sm:$0xff]  ;;  %v403_v6 = vld [vmem:[#allocation7 + $0x18] sm:$0xff]  ;;  %v1731_v27 = vmov 1966171168   ;;  %vm657_vm1 = vcmask 1041409  }
  0xa2   : > { %1387 = vmatprep.subr.bf16.mxu1 %v1728_v0  ;;  %1360 = vmatprep.mubr.msk.f32.mxu1 %vm1729_vm0, %v1730_v1  ;;  %v1364_v5 = vpack.c.bf16 %v401_v3, %v400_v2  ;;  %v1367_v7 = vpack.c.bf16 %v403_v6, %v402_v4  ;;  %v404_v8 = vld [vmem:[#allocation7 + $0x20] sm:$0xff]  ;;  %v405_v9 = vld [vmem:[#allocation7 + $0x28] sm:$0xff]  ;;  %v406_v11 = vld [vmem:[#allocation7 + $0x30] sm:$0xff]  ;;  %v496_v28 = vunpack.c.l.s4 %v1731_v27  ;;  %v2027_v31 = vshrl.u32 %v498_v29, 7  ;;  %s1255_s23 = sshll.u32 %s1800_s9, 7  ;;  %s389_s15 = scalar_lea.vmem [#allocation10], %s1246_s29 }
  0xa3   : > { %v1370_v10 = vpack.c.bf16 %v405_v9, %v404_v8  ;;  %v407_v12 = vld [vmem:[#allocation7 + $0x38] sm:$0xff]  ;;  %v408_v14 = vld [vmem:[#allocation7 + $0x40] sm:$0xff]  ;;  %v409_v15 = vld [vmem:[#allocation7 + $0x48] sm:$0xff]  ;;  %vm659_vm2 = vcmask 1042434   ;;  %vm661_vm3 = vcmask 1043459   ;;  %vm663_vm4 = vcmask 1044484  }
  0xa4   : > { %1365 = vmatpush3.bf16.msra.mxu0 %v1364_v5  ;;  %v1373_v13 = vpack.c.bf16 %v407_v12, %v406_v11  ;;  %v1376_v16 = vpack.c.bf16 %v409_v15, %v408_v14  ;;  %v410_v17 = vld [vmem:[#allocation7 + $0x50] sm:$0xff]  ;;  %v411_v18 = vld [vmem:[#allocation7 + $0x58] sm:$0xff]  ;;  %v412_v20 = vld [vmem:[#allocation7 + $0x60] sm:$0xff]  ;;  %v497_v30 = vunpack.c.0.s8 %v496_v28  ;;  %v2034_v39 = vsub.s32 0, %v2027_v31  ;;  %s1122_s19 = sshll.u32 %s389_s15, 4  ;;  %s1109_s0 = scalar_lea.sflag [#allocation4], %s1986_s16  ;;  %s2216_s19 = int_to_ptr.vmem [resolvable:$true] %s1122_s19 }
  0xa5   : > { %1366 = vmatprep.subr.bf16.mxu0 %v1728_v0  ;;  %v1379_v19 = vpack.c.bf16 %v411_v18, %v410_v17  ;;  %v413_v21 = vld [vmem:[#allocation7 + $0x68] sm:$0xff]  ;;  %v414_v23 = vld [vmem:[#allocation7 + $0x70] sm:$0xff]  ;;  %v415_v24 = vld [vmem:[#allocation7 + $0x78] sm:$0xff]  ;;  %v624_v12 = vand.u32 127, %v498_v29  ;;  %vm665_vm5 = vcmask 1045509   ;;  %vm667_vm6 = vcmask 1046534  }
  0xa6   : > { %v1382_v22 = vpack.c.bf16 %v413_v21, %v412_v20  ;;  %v1385_v25 = vpack.c.bf16 %v415_v24, %v414_v23  ;;  %v2024_v26 = vld [vmem:[%s2000_s21] sm:$0xff]  ;;  %v500_v33 = vsub.s32 %v497_v30, %v2027_v31  ;;  %v2041_v48 = vld [vmem:[%s1990_s4 + $0x10] sm:$0xff]  ;;  %v2052_v58 = vld [vmem:[%s1990_s4 + $0x18] sm:$0xff]  ;;  %vm669_vm7 = vcmask 1047559   ;;  %s1642_s13 = scalar_lea.vmem %s2216_s19, 128  ;;  %p2300_p7 = scmp.ne.s32.totalorder %s2287_s22, 0 }
  0xa7   : > { %v1250_v32 = vld [vmem:[%s2260_s3] ss:$0 sm:$0xff]  ;;  %v2047_v54 = vld [vmem:[%s1990_s4 + $0x8] sm:$0xff]  ;;  %v2067_v6 = vld [vmem:[%s1990_s4 + $0x30] sm:$0xff]  ;;  %v2077_v15 = vsub.s32 %v624_v12, %v2027_v31  ;;  %vm672_vm8 = vcmask 64512   ;;  %p1643_p3 = scmp.ne.s32.totalorder %s2216_s19, %s1642_s13  ;;  %s1733_s9 = smov [#allocation10]  }
  0xa8   : > { %1368 = vmatpush3.bf16.msra.mxu0 %v1367_v7  ;;  %v2037_v43 = vld [vmem:[%s1990_s4] sm:$0xff]  ;;  %v2062_v3 = vld [vmem:[%s1990_s4 + $0x28] sm:$0xff]  ;;  %v2072_v9 = vld [vmem:[%s1990_s4 + $0x38] sm:$0xff]  ;;  %s1646_s29 = sshll.u32 %s1733_s9, 4  ;;  %s1647_s29 = int_to_ptr.vmem [resolvable:$false] %s1646_s29 }
  0xa9   : > { %1369 = vmatprep.subr.bf16.mxu0 %v1728_v0  ;;  %v2057_v62 = vld [vmem:[%s1990_s4 + $0x20] sm:$0xff]  ;;  %s2214_s4 = scalar_lea.hbm %s2265_s8, %s1255_s23  ;;  %p1644_p9 = pnand %p1643_p3, %p2300_p7 }
  0xaa   : > { %s1648_s21 = scalar_lea.vmem %s1647_s29, 256  ;;  %p1649_p5 = scmp.lt.s32.totalorder %s2216_s19, %s1647_s29 }
  0xab   : > { %p1645_p12 = pneg %p1644_p9  ;;  %p1650_p1 = scmp.lt.s32.totalorder %s1648_s21, %s1642_s13 }
  0xac   : > { %1371 = vmatpush3.bf16.msra.mxu0 %v1370_v10 }
  0xad   : > { %1372 = vmatprep.subr.bf16.mxu0 %v1728_v0  ;;  %p1651_p4 = por %p1650_p1, %p1649_p5 }
  0xaf   : > { %p1652_p8 = pnand %p1651_p4, %p1645_p12 }
  0xb0   : > { %1374 = vmatpush3.bf16.msra.mxu0 %v1373_v13 }
  0xb1   : > { %1375 = vmatprep.subr.bf16.mxu0 %v1728_v0 }
  0xb4   : > { %1377 = vmatpush3.bf16.msra.mxu0 %v1376_v16 }
  0xb5   : > { %1378 = vmatprep.subr.bf16.mxu0 %v1728_v0 }
  0xb8   : > { %1380 = vmatpush3.bf16.msra.mxu0 %v1379_v19 }
  0xb9   : > { %1381 = vmatprep.subr.bf16.mxu0 %v1728_v0 }
  0xbc   : > { %1383 = vmatpush3.bf16.msra.mxu0 %v1382_v22 }
  0xbd   : > { %1384 = vmatprep.subr.bf16.mxu0 %v1728_v0 }
  0xc0   : > { %1386 = vmatpush3.bf16.msra.mxu0 %v1385_v25 }
  0xc3   : > { %1326 = vmatmul.mubr.f32.vlgmr.msra.gmra.mrb[0].mxu0 %v2024_v26 }
 0x196   : > { %v489_v34 = vpop.f32.mrb[0].mxu0 }
 0x197   : > { %v490_v35 = vadd.f32 %v1250_v32, %v489_v34  ;;  %v1327_v36 = vpop.f32.mrb[1].mxu0 }
 0x199   : > { %v494_v37 = vcombine.high %v490_v35, %v490_v35  ;;  %v501_v38 = vrot.slane %v490_v35, %v500_v33 }
 0x19b   : > { %v508_v40 = vrot.slane %v494_v37, %v500_v33  ;;  %v509_v41 = vcombine.high %v501_v38, %v501_v38  ;;  %v517_v42 = vrot.slane %v501_v38, %v500_v33 }
 0x19d   : > { %v510_v44 = vcombine.high %v508_v40, %v508_v40  ;;  %v546_v45 = vrot.slane %v517_v42, %v2034_v39  ;;  %v539_v46 = vcombine.high %v517_v42, %v517_v42  ;;  %v531_v47 = vrot.slane %v509_v41, %v500_v33 }
 0x19e   : > { %v524_v49 = vrot.slane %v508_v40, %v500_v33 }
 0x19f   : > { %v583_v50 = vmul.f32 %v546_v45, %v2037_v43  ;;  %v554_v51 = vrot.slane %v539_v46, %v2034_v39  ;;  %v550_v52 = vrot.slane %v531_v47, %v2034_v39  ;;  %v541_v53 = vcombine.high %v531_v47, %v531_v47 }
 0x1a0   : > { %v538_v57 = vrot.slane %v510_v44, %v500_v33  ;;  %v562_v60 = vrot.slane %v524_v49, %v2034_v39  ;;  %v540_v61 = vcombine.high %v524_v49, %v524_v49 }
 0x1a1   : > { %591 = vadd.xlane.f32.xlu0 %v583_v50  ;;  %v585_v55 = vmul.f32 %v554_v51, %v2041_v48  ;;  %v558_v56 = vrot.slane %v541_v53, %v2034_v39  ;;  %v584_v59 = vmul.f32 %v550_v52, %v2047_v54  ;;  %v1732_v51 = vmov 0  }
 0x1a2   : > { %v566_v1 = vrot.slane %v538_v57, %v2034_v39  ;;  %v542_v2 = vcombine.high %v538_v57, %v538_v57  ;;  %v587_v4 = vmul.f32 %v562_v60, %v2057_v62  ;;  %v570_v5 = vrot.slane %v540_v61, %v2034_v39  ;;  %1491 = vset.pattern.permute.xlu0 %v1732_v51 }
 0x1a3   : > { %595 = vadd.xlane.f32.xlu1 %v585_v55  ;;  %v586_v63 = vmul.f32 %v558_v56, %v2052_v58  ;;  %v683_v52 = vsub.s32 1, %v2027_v31  ;;  %v687_v53 = vsub.s32 2, %v2027_v31  ;;  %v691_v55 = vsub.s32 3, %v2027_v31 }
 0x1a4   : > { %v588_v7 = vmul.f32 %v566_v1, %v2062_v3  ;;  %v574_v8 = vrot.slane %v542_v2, %v2034_v39  ;;  %v589_v10 = vmul.f32 %v570_v5, %v2067_v6  ;;  %1490 = vset.pattern.permute.xlu1 %v1732_v51  ;;  %v695_v61 = vsub.s32 4, %v2027_v31 }
 0x1a5   : > { %593 = vadd.xlane.f32.xlu0 %v584_v59 }
 0x1a6   : > { %v590_v11 = vmul.f32 %v574_v8, %v2072_v9  ;;  %v699_v8 = vsub.s32 5, %v2027_v31 }
 0x1a7   : > { %597 = vadd.xlane.f32.xlu1 %v586_v63 }
 0x1a9   : > { %599 = vadd.xlane.f32.xlu0 %v587_v4 }
 0x1ab   : > { %601 = vadd.xlane.f32.xlu1 %v588_v7 }
 0x1ad   : > { %603 = vadd.xlane.f32.xlu0 %v589_v10 }
 0x1af   : > { %605 = vadd.xlane.f32.xlu1 %v590_v11 }
 0x22e   : > { %v592_v13 = vpop.xlane.xlu0 %591 }
 0x22f   : > { %v607_v16 = vmul.f32 0.088388346, %v592_v13  ;;  %v703_v13 = vsub.s32 6, %v2027_v31 }
 0x230   : > { %v596_v14 = vpop.xlane.xlu1 %595 }
 0x231   : > { %v609_v17 = vmul.f32 0.088388346, %v596_v14  ;;  %v628_v21 = vrot.slane %v607_v16, %v2077_v15 }
 0x232   : > { %v594_v18 = vpop.xlane.xlu0 %593 }
 0x233   : > { %v608_v19 = vmul.f32 0.088388346, %v594_v18  ;;  %v636_v24 = vrot.slane %v609_v17, %v2077_v15 }
 0x234   : > { %v598_v20 = vpop.xlane.xlu1 %597 }
 0x235   : > { %v632_v22 = vrot.slane %v608_v19, %v2077_v15  ;;  %v610_v23 = vmul.f32 0.088388346, %v598_v20 }
 0x236   : > { %v600_v25 = vpop.xlane.xlu0 %599 }
 0x237   : > { %v658_v27 = vsel %vm657_vm1, %v632_v22, %v628_v21  ;;  %v640_v28 = vrot.slane %v610_v23, %v2077_v15  ;;  %v611_v29 = vmul.f32 0.088388346, %v600_v25 }
 0x238   : > { %v660_v30 = vsel %vm659_vm2, %v636_v24, %v658_v27  ;;  %v602_v32 = vpop.xlane.xlu1 %601 }
 0x239   : > { %v662_v33 = vsel %vm661_vm3, %v640_v28, %v660_v30  ;;  %v644_v34 = vrot.slane %v611_v29, %v2077_v15  ;;  %v612_v35 = vmul.f32 0.088388346, %v602_v32 }
 0x23a   : > { %v604_v36 = vpop.xlane.xlu0 %603 }
 0x23b   : > { %v664_v37 = vsel %vm663_vm4, %v644_v34, %v662_v33  ;;  %v648_v38 = vrot.slane %v612_v35, %v2077_v15  ;;  %v613_v40 = vmul.f32 0.088388346, %v604_v36 }
 0x23c   : > { %v606_v41 = vpop.xlane.xlu1 %605 }
 0x23d   : > { %v652_v42 = vrot.slane %v613_v40, %v2077_v15  ;;  %v614_v44 = vmul.f32 0.088388346, %v606_v41  ;;  %v666_v45 = vsel %vm665_vm5, %v648_v38, %v664_v37 }
 0x23f   : > { %v656_v46 = vrot.slane %v614_v44, %v2077_v15  ;;  %v668_v47 = vsel %vm667_vm6, %v652_v42, %v666_v45 }
 0x241   : > { %v670_v49 = vsel %vm669_vm7, %v656_v46, %v668_v47 }
 0x242   : > { %v673_v50 = vsel %vm672_vm8, %v670_v49, -inf }
 0x243   : > { %674 = vmax.xlane.f32.xlu0 %v673_v50 }
 0x2d0   : > { %v675_v56 = vpop.xlane.xlu0 %674 }
 0x2d1   : > { %v680_v57 = vrot.slane %v675_v56, %v2034_v39  ;;  %v684_v59 = vrot.slane %v675_v56, %v683_v52  ;;  %v688_v60 = vrot.slane %v675_v56, %v687_v53  ;;  %v692_v63 = vrot.slane %v675_v56, %v691_v55 }
 0x2d2   : > { %v696_v10 = vrot.slane %v675_v56, %v695_v61  ;;  %v700_v14 = vrot.slane %v675_v56, %v699_v8 }
 0x2d3   : > { %v717_v1 = vsub.f32 %v607_v16, %v680_v57  ;;  %v718_v2 = vsub.f32 %v608_v19, %v684_v59  ;;  %v719_v4 = vsub.f32 %v609_v17, %v688_v60  ;;  %v720_v11 = vsub.f32 %v610_v23, %v692_v63 }
 0x2d4   : > { %v721_v18 = vsub.f32 %v611_v29, %v696_v10  ;;  %v707_v17 = vsub.s32 7, %v2027_v31  ;;  %v704_v19 = vrot.slane %v675_v56, %v703_v13  ;;  %v722_v20 = vsub.f32 %v612_v35, %v700_v14  ;;  %v971_v31 = vld [vmem:[#allocation8 + $0x10] sm:$0xff] }
 0x2d5   : > { %v725_v5 = vmul.f32 1.442695, %v717_v1  ;;  %v727_v7 = vmul.f32 1.442695, %v718_v2  ;;  %v729_v12 = vmul.f32 1.442695, %v719_v4 }
 0x2d6   : > { %v731_v16 = vmul.f32 1.442695, %v720_v11  ;;  %v733_v21 = vmul.f32 1.442695, %v721_v18  ;;  %v708_v24 = vrot.slane %v675_v56, %v707_v17  ;;  %v723_v25 = vsub.f32 %v613_v40, %v704_v19 }
 0x2d7   : > { %1492 = vpow2.f32 %v725_v5  ;;  %v735_v27 = vmul.f32 1.442695, %v722_v20 }
 0x2d8   : > { %1494 = vpow2.f32 %v727_v7  ;;  %v724_v29 = vsub.f32 %v614_v44, %v708_v24  ;;  %v737_v30 = vmul.f32 1.442695, %v723_v25 }
 0x2d9   : > { %1496 = vpow2.f32 %v729_v12 }
 0x2da   : > { %1498 = vpow2.f32 %v731_v16  ;;  %v739_v33 = vmul.f32 1.442695, %v724_v29 }
 0x2db   : > { %1500 = vpow2.f32 %v733_v21 }
 0x2dc   : > { %1502 = vpow2.f32 %v735_v27 }
 0x2dd   : > { %1504 = vpow2.f32 %v737_v30 }
 0x2de   : > { %1506 = vpow2.f32 %v739_v33  ;;  %v969_v33 = vld [vmem:[#allocation8] sm:$0xff] }
 0x2e1   : > { %v1493_v22 = vpop.eup %1492 }
 0x2e2   : > { %v2115_v23 = vpop.eup %1494  ;;  %750 = vperm.xlu1 %1490, %v1493_v22  }
 0x2e3   : > { %753 = vperm.xlu0 %1491, %v2115_v23   ;;  %v2120_v28 = vpop.eup %1496 }
 0x2e4   : > { %v2123_v32 = vpop.eup %1498 }
 0x2e5   : > { %v2126_v34 = vpop.eup %1500 }
 0x2e6   : > { %756 = vperm.xlu1 %1490, %v2120_v28   ;;  %v2129_v35 = vpop.eup %1502 }
 0x2e7   : > { %v2132_v36 = vpop.eup %1504 }
 0x2e8   : > { %v2135_v37 = vpop.eup %1506 }
 0x2ea   : > { %759 = vperm.xlu1 %1490, %v2123_v32  }
 0x2ee   : > { %762 = vperm.xlu1 %1490, %v2126_v34  }
 0x2f2   : > { %765 = vperm.xlu1 %1490, %v2129_v35  }
 0x2f6   : > { %768 = vperm.xlu1 %1490, %v2132_v36  }
 0x2fa   : > { %771 = vperm.xlu1 %1490, %v2135_v37  }
 0x361   : > { %v751_v38 = vpop.permute.xlu1 %750 }
 0x362   : > { %v754_v44 = vpop.permute.xlu0 %753  ;;  %v776_v47 = vrot.slane %v751_v38, %v2077_v15  ;;  %v970_v38 = vld [vmem:[#allocation8 + $0x8] sm:$0xff] }
 0x363   : > { %v780_v46 = vrot.slane %v754_v44, %v2077_v15  ;;  %v974_v44 = vld [vmem:[#allocation8 + $0x28] sm:$0xff] }
 0x365   : > { %v757_v40 = vpop.permute.xlu1 %756  ;;  %v805_v57 = vsel %vm657_vm1, %v780_v46, %v776_v47  ;;  %v975_v46 = vld [vmem:[#allocation8 + $0x30] sm:$0xff]  ;;  %v976_v47 = vld [vmem:[#allocation8 + $0x38] sm:$0xff] }
 0x366   : > { %v784_v49 = vrot.slane %v757_v40, %v2077_v15 }
 0x368   : > { %v806_v60 = vsel %vm659_vm2, %v784_v49, %v805_v57  ;;  %v1397_v49 = vpack.c.bf16 %v976_v47, %v975_v46  ;;  %v980_v57 = vld [vmem:[#allocation8 + $0x58] sm:$0xff] }
 0x369   : > { %v760_v41 = vpop.permute.xlu1 %759 }
 0x36a   : > { %v788_v50 = vrot.slane %v760_v41, %v2077_v15 }
 0x36c   : > { %v807_v1 = vsel %vm661_vm3, %v788_v50, %v806_v60  ;;  %v978_v50 = vld [vmem:[#allocation8 + $0x48] sm:$0xff] }
 0x36d   : > { %v763_v42 = vpop.permute.xlu1 %762  ;;  %v982_v60 = vld [vmem:[#allocation8 + $0x68] sm:$0xff] }
 0x36e   : > { %v792_v51 = vrot.slane %v763_v42, %v2077_v15 }
 0x370   : > { %v808_v2 = vsel %vm663_vm4, %v792_v51, %v807_v1  ;;  %v983_v1 = vld [vmem:[#allocation8 + $0x70] sm:$0xff] }
 0x371   : > { %v766_v45 = vpop.permute.xlu1 %765 }
 0x372   : > { %v796_v59 = vrot.slane %v766_v45, %v2077_v15 }
 0x374   : > { %v809_v5 = vsel %vm665_vm5, %v796_v59, %v808_v2  ;;  %v984_v2 = vld [vmem:[#allocation8 + $0x78] sm:$0xff] }
 0x375   : > { %v769_v56 = vpop.permute.xlu1 %768 }
 0x376   : > { %v800_v63 = vrot.slane %v769_v56, %v2077_v15  ;;  %v979_v56 = vld [vmem:[#allocation8 + $0x50] sm:$0xff] }
 0x377   : > { %v1403_v59 = vpack.c.bf16 %v980_v57, %v979_v56 }
 0x378   : > { %v810_v10 = vsel %vm667_vm6, %v800_v63, %v809_v5 }
 0x379   : > { %v772_v4 = vpop.permute.xlu1 %771 }
 0x37a   : > { %v804_v7 = vrot.slane %v772_v4, %v2077_v15  ;;  %v1409_v4 = vpack.c.bf16 %v984_v2, %v983_v1 }
 0x37c   : > { %v811_v11 = vsel %vm669_vm7, %v804_v7, %v810_v10 }
 0x37d   : > { %v813_v12 = vsel %vm672_vm8, %v811_v11, 0.0 }
 0x37e   : > { %814 = vadd.xlane.f32.xlu1 %v813_v12 }
 0x40b   : > { %v815_v14 = vpop.xlane.xlu1 %814 }
 0x40c   : > { %v820_v18 = vrot.slane %v815_v14, %v2034_v39  ;;  %v824_v16 = vrot.slane %v815_v14, %v683_v52  ;;  %v828_v19 = vrot.slane %v815_v14, %v687_v53  ;;  %v832_v15 = vrot.slane %v815_v14, %v691_v55 }
 0x40d   : > { %v836_v21 = vrot.slane %v815_v14, %v695_v61  ;;  %v840_v39 = vrot.slane %v815_v14, %v699_v8  ;;  %v844_v53 = vrot.slane %v815_v14, %v703_v13  ;;  %v848_v61 = vrot.slane %v815_v14, %v707_v17  ;;  %v972_v17 = vld [vmem:[#allocation8 + $0x18] sm:$0xff] }
 0x40e   : > { %1508 = vrcp.f32 %v820_v18  ;;  %v1388_v13 = vpack.c.bf16 %v970_v38, %v969_v33 }
 0x40f   : > { %1510 = vrcp.f32 %v824_v16 }
 0x410   : > { %1512 = vrcp.f32 %v828_v19  ;;  %1389 = vmatpush3.bf16.msra.mxu1 %v1388_v13 }
 0x411   : > { %1514 = vrcp.f32 %v832_v15  ;;  %1390 = vmatprep.subr.bf16.mxu1 %v1728_v0 }
 0x412   : > { %1516 = vrcp.f32 %v836_v21 }
 0x413   : > { %1518 = vrcp.f32 %v840_v39 }
 0x414   : > { %1520 = vrcp.f32 %v844_v53 }
 0x415   : > { %1522 = vrcp.f32 %v848_v61 }
 0x418   : > { %v1509_v20 = vpop.eup %1508 }
 0x419   : > { %v858_v24 = vmul.f32 %v1509_v20, %v1493_v22  ;;  %v1511_v25 = vpop.eup %1510 }
 0x41a   : > { %v860_v52 = vmul.f32 %v1511_v25, %v2115_v23  ;;  %v1513_v27 = vpop.eup %1512 }
 0x41b   : > { %875 = vperm.xlu0 %1491, %v858_v24   ;;  %v862_v55 = vmul.f32 %v1513_v27, %v2120_v28  ;;  %v1515_v29 = vpop.eup %1514 }
 0x41c   : > { %v864_v22 = vmul.f32 %v1515_v29, %v2123_v32  ;;  %v1517_v30 = vpop.eup %1516  ;;  %v1391_v32 = vpack.c.bf16 %v972_v17, %v971_v31 }
 0x41d   : > { %v866_v8 = vmul.f32 %v1517_v30, %v2126_v34  ;;  %v1519_v23 = vpop.eup %1518  ;;  %v973_v34 = vld [vmem:[#allocation8 + $0x20] sm:$0xff] }
 0x41e   : > { %v868_v28 = vmul.f32 %v1519_v23, %v2129_v35  ;;  %v1521_v40 = vpop.eup %1520  ;;  %1392 = vmatpush3.bf16.msra.mxu1 %v1391_v32  ;;  %v1394_v45 = vpack.c.bf16 %v974_v44, %v973_v34 }
 0x41f   : > { %880 = vperm.xlu0 %1491, %v860_v52   ;;  %v870_v41 = vmul.f32 %v1521_v40, %v2132_v36  ;;  %v1523_v42 = vpop.eup %1522  ;;  %1393 = vmatprep.subr.bf16.mxu1 %v1728_v0  ;;  %v977_v36 = vld [vmem:[#allocation8 + $0x40] sm:$0xff] }
 0x420   : > { %v872_v35 = vmul.f32 %v1523_v42, %v2135_v37  ;;  %v1400_v51 = vpack.c.bf16 %v978_v50, %v977_v36  ;;  %v981_v37 = vld [vmem:[#allocation8 + $0x60] sm:$0xff] }
 0x421   : > { %v1406_v63 = vpack.c.bf16 %v982_v60, %v981_v37 }
 0x422   : > { %1395 = vmatpush3.bf16.msra.mxu1 %v1394_v45 }
 0x423   : > { %885 = vperm.xlu0 %1491, %v862_v55   ;;  %1396 = vmatprep.subr.bf16.mxu1 %v1728_v0 }
 0x426   : > { %1398 = vmatpush3.bf16.msra.mxu1 %v1397_v49 }
 0x427   : > { %890 = vperm.xlu0 %1491, %v864_v22   ;;  %1399 = vmatprep.subr.bf16.mxu1 %v1728_v0 }
 0x42a   : > { %1401 = vmatpush3.bf16.msra.mxu1 %v1400_v51 }
 0x42b   : > { %895 = vperm.xlu0 %1491, %v866_v8   ;;  %1402 = vmatprep.subr.bf16.mxu1 %v1728_v0 }
 0x42e   : > { %1404 = vmatpush3.bf16.msra.mxu1 %v1403_v59 }
 0x42f   : > { %900 = vperm.xlu0 %1491, %v868_v28   ;;  %1405 = vmatprep.subr.bf16.mxu1 %v1728_v0 }
 0x432   : > { %1407 = vmatpush3.bf16.msra.mxu1 %v1406_v63 }
 0x433   : > { %905 = vperm.xlu0 %1491, %v870_v41   ;;  %1408 = vmatprep.subr.bf16.mxu1 %v1728_v0 }
 0x436   : > { %1410 = vmatpush3.bf16.msra.mxu1 %v1409_v4 }
 0x437   : > { %910 = vperm.xlu0 %1491, %v872_v35  }
 0x49a   : > { %v876_v5 = vpop.permute.xlu0 %875 }
 0x49b   : > { %v913_v14 = vmul.f32 %v876_v5, %v2037_v43 }
 0x49d   : > { %v921_v20 = vrot.slane %v913_v14, 4 }
 0x49e   : > { %v881_v7 = vpop.permute.xlu0 %880 }
 0x49f   : > { %v914_v11 = vmul.f32 %v881_v7, %v2047_v54  ;;  %v922_v52 = vadd.f32 %v921_v20, %v913_v14 }
 0x4a1   : > { %v927_v16 = vrot.slane %v914_v11, 4  ;;  %v923_v61 = vrot.slane %v922_v52, 2 }
 0x4a2   : > { %v886_v10 = vpop.permute.xlu0 %885 }
 0x4a3   : > { %v915_v12 = vmul.f32 %v886_v10, %v2041_v48  ;;  %v928_v25 = vadd.f32 %v927_v16, %v914_v11  ;;  %v924_v13 = vadd.f32 %v923_v61, %v922_v52 }
 0x4a5   : > { %v933_v15 = vrot.slane %v915_v12, 4  ;;  %v929_v55 = vrot.slane %v928_v25, 2  ;;  %v925_v45 = vrot.slane %v924_v13, 1 }
 0x4a6   : > { %v891_v18 = vpop.permute.xlu0 %890 }
 0x4a7   : > { %v916_v19 = vmul.f32 %v891_v18, %v2052_v58  ;;  %v934_v39 = vadd.f32 %v933_v15, %v915_v12  ;;  %v930_v23 = vadd.f32 %v929_v55, %v928_v25  ;;  %v926_v57 = vadd.f32 %v925_v45, %v924_v13 }
 0x4a9   : > { %v939_v21 = vrot.slane %v916_v19, 4  ;;  %v935_v29 = vrot.slane %v934_v39, 2  ;;  %v931_v41 = vrot.slane %v930_v23, 1 }
 0x4aa   : > { %v896_v24 = vpop.permute.xlu0 %895 }
 0x4ab   : > { %v917_v0 = vmul.f32 %v896_v24, %v2057_v62  ;;  %v940_v27 = vadd.f32 %v939_v21, %v916_v19  ;;  %v936_v62 = vadd.f32 %v935_v29, %v934_v39  ;;  %v932_v36 = vadd.f32 %v931_v41, %v930_v23  ;;  %v1251_v19 = vld [vmem:[%s2262_s5] ss:$0 sm:$0xff] }
 0x4ad   : > { %v945_v53 = vrot.slane %v917_v0, 4  ;;  %v941_v22 = vrot.slane %v940_v27, 2  ;;  %v937_v44 = vrot.slane %v936_v62, 1  ;;  %v1000_v1 = vsel %vm657_vm1, %v932_v36, %v926_v57 }
 0x4ae   : > { %v901_v54 = vpop.permute.xlu0 %900 }
 0x4af   : > { %v946_v48 = vadd.f32 %v945_v53, %v917_v0  ;;  %v918_v43 = vmul.f32 %v901_v54, %v2062_v3  ;;  %v942_v28 = vadd.f32 %v941_v22, %v940_v27  ;;  %v938_v56 = vadd.f32 %v937_v44, %v936_v62 }
 0x4b1   : > { %v951_v58 = vrot.slane %v918_v43, 4  ;;  %v947_v30 = vrot.slane %v946_v48, 2  ;;  %v943_v35 = vrot.slane %v942_v28, 1  ;;  %v1001_v4 = vsel %vm659_vm2, %v938_v56, %v1000_v1 }
 0x4b2   : > { %v906_v8 = vpop.permute.xlu0 %905 }
 0x4b3   : > { %v952_v33 = vadd.f32 %v951_v58, %v918_v43  ;;  %v919_v38 = vmul.f32 %v906_v8, %v2067_v6  ;;  %v948_v17 = vadd.f32 %v947_v30, %v946_v48  ;;  %v944_v59 = vadd.f32 %v943_v35, %v942_v28  ;;  %v1252_v48 = vld [vmem:[%s2263_s6] ss:$0 sm:$0xff] }
 0x4b5   : > { %v953_v40 = vrot.slane %v952_v33, 2  ;;  %v957_v31 = vrot.slane %v919_v38, 4  ;;  %v949_v49 = vrot.slane %v948_v17, 1  ;;  %v1002_v10 = vsel %vm661_vm3, %v944_v59, %v1001_v4 }
 0x4b6   : > { %v911_v32 = vpop.permute.xlu0 %910 }
 0x4b7   : > { %v954_v42 = vadd.f32 %v953_v40, %v952_v33  ;;  %v958_v3 = vadd.f32 %v957_v31, %v919_v38  ;;  %v920_v34 = vmul.f32 %v911_v32, %v2072_v9  ;;  %v950_v63 = vadd.f32 %v949_v49, %v948_v17 }
 0x4b9   : > { %v959_v46 = vrot.slane %v958_v3, 2  ;;  %v963_v47 = vrot.slane %v920_v34, 4  ;;  %v955_v6 = vrot.slane %v954_v42, 1  ;;  %v1003_v11 = vsel %vm663_vm4, %v950_v63, %v1002_v10 }
 0x4bb   : > { %v960_v50 = vadd.f32 %v959_v46, %v958_v3  ;;  %v964_v51 = vadd.f32 %v963_v47, %v920_v34  ;;  %v956_v2 = vadd.f32 %v955_v6, %v954_v42 }
 0x4bd   : > { %v961_v37 = vrot.slane %v960_v50, 1  ;;  %v965_v60 = vrot.slane %v964_v51, 2  ;;  %v1004_v14 = vsel %vm665_vm5, %v956_v2, %v1003_v11 }
 0x4bf   : > { %v966_v9 = vadd.f32 %v965_v60, %v964_v51  ;;  %v962_v5 = vadd.f32 %v961_v37, %v960_v50 }
 0x4c1   : > { %v967_v7 = vrot.slane %v966_v9, 1  ;;  %v1005_v18 = vsel %vm667_vm6, %v962_v5, %v1004_v14 }
 0x4c3   : > { %v968_v12 = vadd.f32 %v967_v7, %v966_v9 }
 0x4c5   : > { %v1006_v16 = vsel %vm669_vm7, %v968_v12, %v1005_v18 }
 0x4c6   : > { %1361 = vmatmul.mubr.f32.vlgmr.msra.gmra.mrb[0].mxu1 %v1006_v16 }
 0x599   : > { %v1074_v15 = vpop.f32.mrb[0].mxu1 }
 0x59a   : > { %v1075_v20 = vadd.f32 %v1251_v19, %v1074_v15  ;;  %v1362_v21 = vpop.f32.mrb[1].mxu1 }
 0x59c   : > { %v1078_v24 = vadd.f32 %v1075_v20, %v2024_v26  ;;  %v1253_v26 = vld [vmem:[%s2264_s7] ss:$0 sm:$0xff] }
 0x59e   : > { %1079 = vadd.xlane.f32.xlu1 %v1078_v24 }
 0x62b   : > { %v1080_v25 = vpop.xlane.xlu1 %1079 }
 0x62c   : > { %v1082_v0 = vmul.f32 0.0078125, %v1080_v25 }
 0x62e   : > { %v1083_v39 = vsub.f32 %v1078_v24, %v1082_v0 }
 0x630   : > { %v1084_v52 = vmul.f32 %v1083_v39, %v1083_v39 }
 0x632   : > { %1085 = vadd.xlane.f32.xlu0 %v1084_v52 }
 0x6bf   : > { %v1086_v27 = vpop.xlane.xlu0 %1085 }
 0x6c0   : > { %v1087_v53 = vmul.f32 0.0078125, %v1086_v27 }
 0x6c2   : > { %v1088_v54 = vadd.f32 1e-05, %v1087_v53 }
 0x6c4   : > { %1524 = vrsqrt.f32 %v1088_v54 }
 0x6ce   : > { %v1525_v55 = vpop.eup %1524 }
 0x6cf   : > { %v1090_v43 = vmul.f32 %v1525_v55, %v1083_v39 }
 0x6d1   : > { %v1098_v29 = vmul.f32 %v1252_v48, %v1090_v43 }
 0x6d3   : > { %v1106_v61 = vadd.f32 %v1253_v26, %v1098_v29 }
 0x6d5   : > { %1107 = vst [vmem:[%s389_s15] sm:$0xff] %v1106_v61 }
 0x6d6   : > { %1655 = shalt.err (!%p1652_p8)
}
 0x6d7   : > { %s1656_s16 = scalar_lea.hbm %s2214_s4, 128  ;;  %s1660_s2 = scalar_lea.hbm %s2265_s8, 1024 }
 0x6d8   : > { %p1657_p2 = scmp.ne.s32.totalorder %s2214_s4, %s1656_s16  ;;  %p1661_p0 = scmp.lt.u32.totalorder %s2214_s4, %s2265_s8 }
 0x6d9   : > { %p1662_p11 = scmp.lt.u32.totalorder %s1660_s2, %s1656_s16  ;;  %p1664_p3 = scmp.lt.u32.totalorder %s1656_s16, %s2214_s4 }
 0x6da   : > { %p1658_p6 = pnand %p1657_p2, %p2300_p7 }
 0x6db   : > { %p1663_p13 = por %p1662_p11, %p1661_p0 }
 0x6dc   : > { %p1659_p10 = pneg %p1658_p6 }
 0x6dd   : > { %p1665_p9 = por %p1664_p3, %p1663_p13 }
 0x6df   : > { %p1666_p12 = pnand %p1665_p9, %p1659_p10 }
 0x6e1   : > { %1669 = shalt.err (!%p1666_p12)
}
 0x6e2   : > { %1423 = dma.vmem_to_hbm [thread:$0]  (%p2300_p7), %s2216_s19, 128, %s2214_s4, %s1109_s0  }
 0x6e3 PF: > { %p1448_p5 = scmp.ge.s32.totalorder %s1720_s30, 2  ;;  %s1134_s24 = sand.u32 1, %s1708_s27  }
 0x6e4   : > { %p2301_p1 = scmp.ne.s32.totalorder %s2280_s12, 0  ;;  %s1135_s26 = scalar_lea.sflag [#allocation4], %s1134_s24 }
 0x6e6   : > { %p1440_p4 = pnand %p1448_p5, %p2301_p1 }
 0x6e8   : > { %1703 = dma.done.wait (!%p1440_p4), %s1135_s26, 128  }
 0x6e9   : > { %1705 = vsyncadd (!%p1440_p4), %s1135_s26, 4294967168  ;;  %s2302_s30 = sld [smem:[#allocation17_spill]]  ;;  %s2303_s14 = sld [smem:[#allocation16_spill]] }
 0x6ea   : > { %s2304_s29 = sld [smem:[#allocation18_spill]]  ;;  %s2305_s27 = smov %s1712_s28 }
 0x6ef   : > { %p25_p8 = scmp.ge.s32.totalorder %s2302_s30, 10   ;;  %s2306_s28 = smov %s2303_s14 }
 0x6f1   :  { %27 = sbr.rel (!%p25_p8) target bundleno = 12 (0xc), region = 118 }
 0x6f8   :  { %1140 = vsyncpa [#allocation3], 1 }
 0x6f9   :  { %1142 = vsyncpa [#allocation3 + $0x1], 1 }
 0x6fa   :  { %1143 = vsyncpa [#allocation6], 1 }
 0x6fb   :  { %1145 = vsyncpa [#allocation6 + $0x1], 1 }
 0x6fc   :  { %1146 = vsyncpa [#allocation9], 1 }
 0x6fd   :  { %1147 = vsyncpa [#allocation4], 1 }
 0x6fe   :  { %1149 = vsyncpa [#allocation4 + $0x1], 1 }

</bundles_post_ra>
